<compile_context>
chip_gen: v7x
topology: tpu7x:2x2x1
jax: 0.10.0
libtpu: 0.0.40
codegen_flags: <defaults>
</compile_context>

<pallas_src>
import jax
import jax.numpy as jnp
from jax.experimental import pallas as pl
from jax.experimental.pallas import tpu as pltpu

LANES = 128
MAX_BLOCK_ROWS = 1024  # 1024x128 f32 tile = 512 KiB; ~85% of HBM roofline plateau


def _gaussian_rbf_kernel(eps_ref, x_ref, o_ref):
    # eps_ref: (1,) scalar in SMEM; x_ref/o_ref: lane-dense (block_rows, 128) VMEM tiles.
    eps = eps_ref[0]
    y = eps * x_ref[...].astype(jnp.float32)
    o_ref[...] = jnp.exp(-(y * y)).astype(o_ref.dtype)


def gaussian_rbf_pallas(x: jax.Array, epsilon) -> jax.Array:
    orig_shape = x.shape
    orig_dtype = x.dtype
    total = x.size

    # Dtype-aware sublane granularity: 8 for f32, 16 for bf16/f16, 32 for int8/fp8.
    sublanes = max(8, 32 // jnp.dtype(orig_dtype).itemsize)
    tile_elems = LANES * sublanes

    x_flat = x.reshape(-1)
    pad = (-total) % tile_elems
    if pad:
        # Ragged tail (not hit for the (2,4,16,16) case): one jnp.pad HLO, padded
        # elements are computed (exp(0)=1) and sliced off below — numerically safe.
        # TODO(synk): move the tail handling in-kernel (cdiv grid + masked store)
        # to drop even this HLO for ragged shapes.
        x_flat = jnp.pad(x_flat, (0, pad))

    rows = x_flat.size // LANES  # multiple of `sublanes` by construction
    x2d = x_flat.reshape(rows, LANES)

    # Largest block up to MAX_BLOCK_ROWS; pl.cdiv grid handles any remainder
    # (rows is always a multiple of `sublanes`, so blocks stay layout-legal).
    block_rows = rows if rows <= MAX_BLOCK_ROWS else MAX_BLOCK_ROWS
    grid = (pl.cdiv(rows, block_rows),)

    eps_arr = jnp.asarray(epsilon, dtype=jnp.float32).reshape(1)

    out2d = pl.pallas_call(
        _gaussian_rbf_kernel,
        out_shape=jax.ShapeDtypeStruct((rows, LANES), orig_dtype),
        grid_spec=pltpu.PrefetchScalarGridSpec(
            num_scalar_prefetch=0,
            grid=grid,
            in_specs=[
                pl.BlockSpec(memory_space=pltpu.MemorySpace.SMEM),   # epsilon scalar
                pl.BlockSpec((block_rows, LANES), lambda i: (i, 0)),  # x tile
            ],
            out_specs=pl.BlockSpec((block_rows, LANES), lambda i: (i, 0)),
        ),
        compiler_params=pltpu.CompilerParams(
            dimension_semantics=("parallel",),  # lets v7x shard rows across its 2 TCs
        ),
    )(eps_arr, x2d)

    out_flat = out2d.reshape(-1)
    if pad:
        out_flat = out_flat[:total]
    return out_flat.reshape(orig_shape)


if __name__ == "__main__":
    key = jax.random.PRNGKey(0)
    x = jax.random.normal(key, (2, 4, 16, 16), dtype=jnp.float32)
    epsilon = 1.0  # matches GaussianRBF(epsilon=1) default parameter

    out = gaussian_rbf_pallas(x, epsilon)
    jax.block_until_ready(out)

    # Reference: torch.exp(-(epsilon * x) ** 2) semantics in plain JAX.
    ref = jnp.exp(-(jnp.float32(epsilon) * x) ** 2)
    assert out.shape == x.shape and out.dtype == x.dtype
    assert jnp.allclose(out, ref, atol=1e-6, rtol=1e-6)

    print("KERNEL_OK")
</pallas_src>

<mosaic_0001>
module attributes {stable_mosaic.version = 11 : i64} {
  func.func @_gaussian_rbf_kernel(%arg0: i32, %arg1: memref<1xf32, #tpu.memory_space<smem>>, %arg2: memref<16x128xf32, #tpu.memory_space<vmem>>, %arg3: memref<16x128xf32, #tpu.memory_space<vmem>>) attributes {dimension_semantics = [#tpu.dimension_semantics<parallel>], iteration_bounds = array<i64: 1>, scalar_prefetch = 0 : i64, scratch_operands = 0 : i64, tpu.core_type = #tpu.core_type<tc>, window_params = [{transform_indices = @transform_0, window_bounds = array<i64: 1>}, {transform_indices = @transform_1, window_bounds = array<i64: 16, 128>}, {transform_indices = @transform_2, window_bounds = array<i64: 16, 128>}]} {
    %c0 = arith.constant 0 : index
    %0 = memref.load %arg1[%c0] : memref<1xf32, #tpu.memory_space<smem>>
    %c0_0 = arith.constant 0 : index
    %c0_1 = arith.constant 0 : index
    %1 = vector.load %arg2[%c0_0, %c0_1] : memref<16x128xf32, #tpu.memory_space<vmem>>, vector<16x128xf32>
    %2 = vector.broadcast %0 : f32 to vector<16x128xf32>
    %3 = arith.mulf %2, %1 : vector<16x128xf32>
    %4 = arith.mulf %3, %3 : vector<16x128xf32>
    %cst = arith.constant 0.000000e+00 : f32
    %5 = vector.broadcast %cst : f32 to vector<16x128xf32>
    %6 = arith.subf %5, %4 : vector<16x128xf32>
    %7 = math.exp %6 : vector<16x128xf32>
    %c0_2 = arith.constant 0 : index
    %c0_3 = arith.constant 0 : index
    %8 = vector.load %arg3[%c0_2, %c0_3] : memref<16x128xf32, #tpu.memory_space<vmem>>, vector<16x128xf32>
    tpu.vector_store %arg3[%c0_2, %c0_3], %7 {strides = array<i32>} : memref<16x128xf32, #tpu.memory_space<vmem>>, vector<16x128xf32>,
    return
  }
  func.func @transform_0(%arg0: i32) -> i32 {
    %c0_i32 = arith.constant 0 : i32
    %c0_i32_0 = arith.constant 0 : i32
    return %c0_i32 : i32
  }
  func.func @transform_1(%arg0: i32) -> (i32, i32) {
    %c0_i32 = arith.constant 0 : i32
    %c0_i32_0 = arith.constant 0 : i32
    return %arg0, %c0_i32 : i32, i32
  }
  func.func @transform_2(%arg0: i32) -> (i32, i32) {
    %c0_i32 = arith.constant 0 : i32
    %c0_i32_0 = arith.constant 0 : i32
    return %arg0, %c0_i32 : i32, i32
  }
}

</mosaic_0001>

<bundles_post_ra>
// kernel: tpu_custom_call.1
= control target key start
LH: loop header
LB: loop body
LE: loop exit
PB: predicated region body
PF: predicated region fallthrough
CT: control target
= control target key end

     0   :  { %8 = vsyncpa [#allocation4], 0  ;;  %s168_s0 = inlined_call_operand.<no memory space> [shape: f32[1], index: 0, kind: input, shape index: {}]   ;;  %s169_s1 = inlined_call_operand.hbm [shape: f32[16,128], index: 1, kind: input, shape index: {}]   ;;  %s170_s2 = inlined_call_operand.hbm [shape: f32[16,128], index: 2, kind: output, shape index: {}]  }
   0x1   :  { %9 = vsyncpa [#allocation5], 0  ;;  %s116_s9 = smov [#allocation3]   ;;  %s68_s13 = scalar_lea.hbm %s169_s1, 256 }
   0x2   :  { %s17_s10 = sshll.u32 %s116_s9, 4  ;;  %p69_p0 = scmp.ne.s32.totalorder %s169_s1, %s68_s13  ;;  %s18_s10 = int_to_ptr.vmem [resolvable:$true] %s17_s10 }
   0x3   :  { %p72_p1 = scmp.lt.u32.totalorder %s68_s13, %s169_s1 }
   0x5   :  { %p74_p2 = pnand %p72_p1, %p69_p0 }
   0x7   :  { %77 = shalt.err (!%p74_p2)
}
   0x8   :  { %s78_s18 = scalar_lea.vmem %s18_s10, 256  ;;  %p83_p4 = scmp.lt.s32.totalorder %s18_s10, %s18_s10 }
   0x9   :  { %p79_p3 = scmp.ne.s32.totalorder %s18_s10, %s78_s18  ;;  %p84_p5 = scmp.lt.s32.totalorder %s78_s18, %s78_s18 }
   0xb   :  { %p85_p6 = por %p84_p5, %p83_p4 }
   0xd   :  { %p86_p7 = pnand %p85_p6, %p79_p3 }
   0xf   :  { %89 = shalt.err (!%p86_p7)
}
  0x10   :  { %s117_s19 = smov 128   ;;  %s118_s20 = smov 8  }
  0x11   :  { %23 = dma.hbm_to_vmem [thread:$0]  %s169_s1, 256, %s18_s10, [#allocation4], %s117_s19, %s117_s19, %s118_s20  }
  0x12   :  { %112 = dma.done.wait [#allocation4], 256  }
  0x13   :  { %113 = vsyncadd [#allocation4], 4294967040  ;;  %v30_v0 = vstv %s168_s0  ;;  %v28_v1 = vld [vmem:[#allocation3] sm:$0xff]  ;;  %v29_v2 = vld [vmem:[#allocation3 + $0x8] sm:$0xff]  ;;  %s119_s25 = smov [#allocation6]  }
  0x14   :  { %v31_v3 = vmul.f32 %v30_v0, %v28_v1  ;;  %v32_v4 = vmul.f32 %v30_v0, %v29_v2  ;;  %s48_s1 = sshll.u32 %s119_s25, 4  ;;  %s49_s1 = int_to_ptr.vmem [resolvable:$true] %s48_s1 }
  0x15   :  { %s90_s0 = scalar_lea.vmem %s49_s1, 256  ;;  %p95_p9 = scmp.lt.s32.totalorder %s49_s1, %s49_s1 }
  0x16   :  { %v33_v5 = vmul.f32 %v31_v3, %v31_v3  ;;  %v34_v6 = vmul.f32 %v32_v4, %v32_v4  ;;  %p91_p8 = scmp.ne.s32.totalorder %s49_s1, %s90_s0  ;;  %p96_p10 = scmp.lt.s32.totalorder %s90_s0, %s90_s0 }
  0x18   :  { %v35_v7 = vsub.f32 0.0, %v33_v5  ;;  %v36_v8 = vsub.f32 0.0, %v34_v6  ;;  %p97_p11 = por %p96_p10, %p95_p9 }
  0x1a   :  { %v37_v9 = vmul.f32 1.442695, %v35_v7  ;;  %v39_v10 = vmul.f32 1.442695, %v36_v8  ;;  %p98_p12 = pnand %p97_p11, %p91_p8 }
  0x1c   :  { %64 = vpow2.f32 %v37_v9 }
  0x1d   :  { %66 = vpow2.f32 %v39_v10 }
  0x26   :  { %v65_v11 = vpop.eup %64 }
  0x27   :  { %v67_v12 = vpop.eup %66  ;;  %41 = vst [vmem:[#allocation6] sm:$0xff] %v65_v11 }
  0x28   :  { %42 = vst [vmem:[#allocation6 + $0x8] sm:$0xff] %v67_v12 }
  0x29   :  { %101 = shalt.err (!%p98_p12)
}
  0x2a   :  { %s102_s28 = scalar_lea.hbm %s170_s2, 256 }
  0x2b   :  { %p103_p13 = scmp.ne.s32.totalorder %s170_s2, %s102_s28  ;;  %p106_p0 = scmp.lt.u32.totalorder %s102_s28, %s170_s2 }
  0x2d   :  { %p108_p1 = pnand %p106_p0, %p103_p13 }
  0x2f   :  { %111 = shalt.err (!%p108_p1)
}
  0x30   :  { %54 = dma.vmem_to_hbm [thread:$0]  %s49_s1, 256, %s170_s2, [#allocation5], %s117_s19, %s117_s19, %s118_s20  }
  0x31   :  { %114 = dma.done.wait [#allocation5], 256  }
  0x32   :  { %115 = vsyncadd [#allocation5], 4294967040 }
  0x33   :  { %58 = vsyncpa [#allocation4], 1 }
  0x34   :  { %59 = vsyncpa [#allocation5], 1 }

</bundles_post_ra>
